<compile_context>
chip_gen: v6e
topology: v6e:2x2x1
jax: 0.10.0
libtpu: 0.0.40
codegen_flags: <defaults>
</compile_context>

<pallas_src>
import jax
import jax.numpy as jnp
from jax import lax
from jax.experimental import pallas as pl
from jax.experimental.pallas import tpu as pltpu


_NSEM = 8  # DMA semaphores shared round-robin across in-flight row copies


def _embedding_gather_kernel(idx_ref, table_hbm, out_ref, row_buf, sems):
    # idx_ref   : (n_pad,) int32  SMEM   scalar-prefetched flat indices
    # table_hbm : (V, E)   f32    HBM    (pl.ANY, un-tiled)
    # out_ref   : (T, E)   f32    VMEM   output block for this grid step
    # row_buf   : (T, E)   f32    VMEM   DMA landing buffer (scratch)
    # sems      : (NSEM,)  DMA semaphores
    tile = out_ref.shape[0]
    nsem = sems.shape[0]
    base = pl.program_id(0) * tile

    # Issue all T row DMAs (HBM row -> VMEM scratch row), keeping them in
    # flight concurrently; semaphores are shared round-robin.
    def issue(t, carry):
        row = idx_ref[base + t]
        pltpu.make_async_copy(
            table_hbm.at[pl.ds(row, 1), :],
            row_buf.at[pl.ds(t, 1), :],
            sems.at[t % nsem],
        ).start()
        return carry

    lax.fori_loop(0, tile, issue, 0)

    # Drain: every copy has the same shape, so waiting once per issued copy on
    # its semaphore guarantees all rows have landed before we read row_buf.
    def drain(t, carry):
        pltpu.make_async_copy(
            table_hbm.at[pl.ds(0, 1), :],
            row_buf.at[pl.ds(t, 1), :],
            sems.at[t % nsem],
        ).wait()
        return carry

    lax.fori_loop(0, tile, drain, 0)

    out_ref[...] = row_buf[...]


def _round_up(x: int, m: int) -> int:
    return ((x + m - 1) // m) * m


def _pick_tile(n: int, max_tile: int) -> int:
    # Multiple of 8 sublanes, capped at max_tile, and small enough that the
    # grid has >= 2 steps when possible (so v7x's two TensorCores both work).
    half = _round_up(max(n // 2, 1), 8)
    return max(8, min(max_tile, half))


def pretrained_embedding_lookup(embedding_matrix: jax.Array,
                                indices: jax.Array,
                                *, max_tile: int = 128) -> jax.Array:
    """Equivalent of PretrainedEmbedding.forward(indices): table[indices]."""
    V, E = embedding_matrix.shape
    orig_shape = indices.shape
    flat_idx = indices.reshape(-1).astype(jnp.int32)
    N = int(flat_idx.shape[0])

    T = _pick_tile(N, max_tile)
    n_pad = _round_up(N, T)
    if n_pad != N:
        # Padded positions gather row 0 (valid, sliced off below).
        flat_idx = jnp.pad(flat_idx, (0, n_pad - N))

    out = pl.pallas_call(
        _embedding_gather_kernel,
        out_shape=jax.ShapeDtypeStruct((n_pad, E), embedding_matrix.dtype),
        grid_spec=pltpu.PrefetchScalarGridSpec(
            num_scalar_prefetch=1,
            grid=(n_pad // T,),
            in_specs=[
                # Table stays in HBM; rows are gathered with manual DMAs.
                pl.BlockSpec(memory_space=pl.ANY),
            ],
            out_specs=pl.BlockSpec((T, E), lambda i, idx: (i, 0)),
            scratch_shapes=[
                pltpu.VMEM((T, E), embedding_matrix.dtype),
                pltpu.SemaphoreType.DMA((_NSEM,)),
            ],
        ),
        compiler_params=pltpu.CompilerParams(
            dimension_semantics=("parallel",),
        ),
    )(flat_idx, embedding_matrix)

    if n_pad != N:
        out = out[:N]
    return out.reshape(*orig_shape, E)


if __name__ == "__main__":
    # Deterministic synthetic embedding matrix (stands in for the pretrained
    # numpy embedding_matrix passed to the torch module's __init__).
    V, E = 50, 128          # max_features, embed_size
    B, S = 2, 8             # batch, sequence length of index tensor

    key = jax.random.PRNGKey(0)
    k_emb, k_idx = jax.random.split(key)
    embedding_matrix = jax.random.normal(k_emb, (V, E), dtype=jnp.float32)
    indices = jax.random.randint(k_idx, (B, S), minval=0, maxval=V,
                                 dtype=jnp.int32)

    out = pretrained_embedding_lookup(embedding_matrix, indices)
    out = jax.block_until_ready(out)

    # Reference check against plain JAX take (== torch nn.Embedding lookup).
    ref = jnp.take(embedding_matrix, indices, axis=0)
    assert out.shape == (B, S, E), out.shape
    assert out.dtype == jnp.float32
    assert jnp.array_equal(out, ref), "mismatch vs reference"   # bit-exact

    print("KERNEL_OK")
</pallas_src>

<mosaic_0001>
module attributes {stable_mosaic.version = 11 : i64} {
  func.func @_embedding_gather_kernel(%arg0: i32, %arg1: memref<16xi32, #tpu.memory_space<smem>>, %arg2: memref<50x128xf32, #tpu.memory_space<any>>, %arg3: memref<8x128xf32, #tpu.memory_space<vmem>>, %arg4: memref<8x128xf32, #tpu.memory_space<vmem>>, %arg5: memref<8x!tpu.dma_semaphore, #tpu.memory_space<semaphore_mem>>) attributes {dimension_semantics = [#tpu.dimension_semantics<parallel>], iteration_bounds = array<i64: 2>, scalar_prefetch = 1 : i64, scratch_operands = 2 : i64, tpu.core_type = #tpu.core_type<tc>, window_params = [{}, {transform_indices = @transform_1, window_bounds = array<i64: 8, 128>}]} {
    %c8_i32 = arith.constant 8 : i32
    %0 = arith.muli %arg0, %c8_i32 : i32
    %c0_i32 = arith.constant 0 : i32
    %c8_i32_0 = arith.constant 8 : i32
    %1 = arith.addi %c0_i32, %c8_i32_0 : i32
    %c1_i32 = arith.constant 1 : i32
    scf.for %arg6 = %c0_i32 to %1 step %c1_i32  : i32 {
      %5 = arith.addi %0, %arg6 : i32
      %6 = arith.index_cast %5 : i32 to index
      %7 = memref.load %arg1[%6] : memref<16xi32, #tpu.memory_space<smem>>
      %c8_i32_9 = arith.constant 8 : i32
      %c0_i32_10 = arith.constant 0 : i32
      %8 = arith.cmpi eq, %c8_i32_9, %c0_i32_10 : i32
      %c1_i32_11 = arith.constant 1 : i32
      %9 = arith.select %8, %c1_i32_11, %c8_i32_9 : i32
      %10 = arith.remsi %arg6, %9 : i32
      %c0_i32_12 = arith.constant 0 : i32
      %11 = arith.cmpi ne, %10, %c0_i32_12 : i32
      %c0_i32_13 = arith.constant 0 : i32
      %12 = arith.cmpi slt, %10, %c0_i32_13 : i32
      %c0_i32_14 = arith.constant 0 : i32
      %13 = arith.cmpi slt, %9, %c0_i32_14 : i32
      %14 = arith.xori %12, %13 : i1
      %15 = arith.andi %14, %11 : i1
      %16 = arith.addi %10, %9 : i32
      %17 = arith.select %15, %16, %10 : i32
      %c0_i32_15 = arith.constant 0 : i32
      %18 = tpu.memref_slice %arg2[%7, %c0_i32_15] : memref<50x128xf32, #tpu.memory_space<any>> -> memref<1x128xf32, #tpu.memory_space<any>>
      %c0_i32_16 = arith.constant 0 : i32
      %19 = tpu.memref_slice %arg4[%arg6, %c0_i32_16] : memref<8x128xf32, #tpu.memory_space<vmem>> -> memref<1x128xf32, #tpu.memory_space<vmem>>
      %20 = tpu.memref_slice %arg5[%17] : memref<8x!tpu.dma_semaphore, #tpu.memory_space<semaphore_mem>> -> memref<1x!tpu.dma_semaphore, #tpu.memory_space<semaphore_mem>>
      %21 = tpu.memref_squeeze %20 : memref<1x!tpu.dma_semaphore, #tpu.memory_space<semaphore_mem>> -> memref<!tpu.dma_semaphore, #tpu.memory_space<semaphore_mem>>
      tpu.enqueue_dma source(%18 : memref<1x128xf32, #tpu.memory_space<any>>) target(%19 : memref<1x128xf32, #tpu.memory_space<vmem>>) target_semaphore(%21 : memref<!tpu.dma_semaphore, #tpu.memory_space<semaphore_mem>>)
    }
    %c8_i32_1 = arith.constant 8 : i32
    %c0_i32_2 = arith.constant 0 : i32
    %c8_i32_3 = arith.constant 8 : i32
    %2 = arith.addi %c0_i32_2, %c8_i32_3 : i32
    %c1_i32_4 = arith.constant 1 : i32
    scf.for %arg6 = %c0_i32_2 to %2 step %c1_i32_4  : i32 {
      %c8_i32_9 = arith.constant 8 : i32
      %c0_i32_10 = arith.constant 0 : i32
      %5 = arith.cmpi eq, %c8_i32_9, %c0_i32_10 : i32
      %c1_i32_11 = arith.constant 1 : i32
      %6 = arith.select %5, %c1_i32_11, %c8_i32_9 : i32
      %7 = arith.remsi %arg6, %6 : i32
      %c0_i32_12 = arith.constant 0 : i32
      %8 = arith.cmpi ne, %7, %c0_i32_12 : i32
      %c0_i32_13 = arith.constant 0 : i32
      %9 = arith.cmpi slt, %7, %c0_i32_13 : i32
      %c0_i32_14 = arith.constant 0 : i32
      %10 = arith.cmpi slt, %6, %c0_i32_14 : i32
      %11 = arith.xori %9, %10 : i1
      %12 = arith.andi %11, %8 : i1
      %13 = arith.addi %7, %6 : i32
      %14 = arith.select %12, %13, %7 : i32
      %c0_i32_15 = arith.constant 0 : i32
      %c0_i32_16 = arith.constant 0 : i32
      %15 = tpu.memref_slice %arg2[%c0_i32_15, %c0_i32_16] : memref<50x128xf32, #tpu.memory_space<any>> -> memref<1x128xf32, #tpu.memory_space<any>>
      %c0_i32_17 = arith.constant 0 : i32
      %16 = tpu.memref_slice %arg4[%arg6, %c0_i32_17] : memref<8x128xf32, #tpu.memory_space<vmem>> -> memref<1x128xf32, #tpu.memory_space<vmem>>
      %17 = tpu.memref_slice %arg5[%14] : memref<8x!tpu.dma_semaphore, #tpu.memory_space<semaphore_mem>> -> memref<1x!tpu.dma_semaphore, #tpu.memory_space<semaphore_mem>>
      %18 = tpu.memref_squeeze %17 : memref<1x!tpu.dma_semaphore, #tpu.memory_space<semaphore_mem>> -> memref<!tpu.dma_semaphore, #tpu.memory_space<semaphore_mem>>
      tpu.wait_dma2 semaphore(%18 : memref<!tpu.dma_semaphore, #tpu.memory_space<semaphore_mem>>) src(%15 : memref<1x128xf32, #tpu.memory_space<any>>) dst(%16 : memref<1x128xf32, #tpu.memory_space<vmem>>)
    }
    %c8_i32_5 = arith.constant 8 : i32
    %c0 = arith.constant 0 : index
    %c0_6 = arith.constant 0 : index
    %3 = vector.load %arg4[%c0, %c0_6] : memref<8x128xf32, #tpu.memory_space<vmem>>, vector<8x128xf32>
    %c0_7 = arith.constant 0 : index
    %c0_8 = arith.constant 0 : index
    %4 = vector.load %arg3[%c0_7, %c0_8] : memref<8x128xf32, #tpu.memory_space<vmem>>, vector<8x128xf32>
    tpu.vector_store %arg3[%c0_7, %c0_8], %3 {strides = array<i32>} : memref<8x128xf32, #tpu.memory_space<vmem>>, vector<8x128xf32>,
    return
  }
  func.func @transform_1(%arg0: i32, %arg1: memref<16xi32, #tpu.memory_space<smem>>) -> (i32, i32) {
    %c0_i32 = arith.constant 0 : i32
    %c0_i32_0 = arith.constant 0 : i32
    return %arg0, %c0_i32 : i32, i32
  }
}

</mosaic_0001>

<bundles_post_ra>
// kernel: tpu_custom_call.1
= control target key start
LH: loop header
LB: loop body
LE: loop exit
PB: predicated region body
PF: predicated region fallthrough
CT: control target
= control target key end

     0   :  { %s415_s9 = smov [#allocation5]   ;;  %s540_s0 = inlined_call_operand.hbm [shape: s32[16], index: 0, kind: input, shape index: {}]   ;;  %s541_s1 = inlined_call_operand.hbm [shape: f32[50,128], index: 1, kind: input, shape index: {}]   ;;  %s542_s2 = inlined_call_operand.hbm [shape: f32[16,128], index: 2, kind: output, shape index: {}]  }
   0x1   :  { %8 = dma.hbm_to_smem %s540_s0, 16, %s415_s9, [#allocation4] }
   0x2   :  { %387 = dma.done.wait [#allocation4], 16 }
   0x3   :  { %388 = vsyncadd [#allocation4], 4294967280 }
   0x4   :  { %10 = sfence }
   0x5   :  { %11 = vsyncpa [#allocation7], 0 }
   0x6   :  { %13 = vsyncpa [#allocation7 + $0x1], 0  ;;  %s436_s12 = smov 0   ;;  %s438_s13 = smov 0  }
   0x7   :  { %s440_s14 = smov 0  }
   0x8 LB: > { %s239_s0 = sadd.s32 4294967295, %s405_s14   ;;  %s453_s15 = sadd.s32 1, %s405_s14   ;;  %s405_s14 = sphi %s440_s14, %s547_s14   ;;  %s401_s13 = sphi %s438_s13, %s546_s13   ;;  %s397_s12 = sphi %s436_s12, %s545_s12  }
   0x9   : > { %s22_s16 = ssub.s32 %s405_s14, %s453_s15  ;;  %s25_s17 = sadd.s32 1, %s401_s13 }
   0xa   : > { %p23_p0 = scmp.eq.s32.totalorder %s22_s16, 0  ;;  %p240_p1 = scmp.ne.s32.totalorder %s22_s16, 0 }
   0xb   : > { %p29_p2 = scmp.eq.s32.totalorder %s405_s14, 1  ;;  %p34_p3 = scmp.ne.s32.totalorder %s401_s13, %s397_s12 }
   0xc   : > { %s462_s18 = scalar_select %p23_p0, %s401_s13, %s25_s17  }
   0xd   : > { %p464_p4 = por %p240_p1, %p29_p2  ;;  %p35_p5 = scmp.eq.s32.totalorder %s239_s0, 1 }
   0xe   : > { %p241_p7 = scmp.ge.s32.totalorder %s405_s14, 2 }
   0xf   : > { %p468_p6 = por %p35_p5, %p34_p3  ;;  %s49_s21 = sand.u32 (!%p241_p7), 1, %s401_s13  }
  0x10   : > { %44 = sbr.rel (%p241_p7) target bundleno = 94 (0x5e), region = 12  ;;  %s243_s22 = sshll.u32 (!%p241_p7), %s405_s14, 3 }
  0x11   : > { %s477_s23 = sshll.u32 (!%p241_p7), %s49_s21, 3  ;;  %s480_s25 = smov (!%p241_p7), 0  }
  0x12   : > { %s51_s24 = scalar_lea.vmem (!%p241_p7), [#allocation6], %s477_s23 }
  0x15 LB: >> { %s59_s26 = sadd.s32 %s409_s25, %s243_s22  ;;  %p61_p8 = scmp.lt.s32.totalorder %s409_s25, 0  ;;  %s409_s25 = sphi %s480_s25, %s58_s25  }
  0x16   : >> { %s60_s27 = sld [smem:[#allocation5 + %s59_s26]]  ;;  %s62_s28 = ssub.s32 0, %s409_s25 }
  0x17   : >> { %s244_s29 = smin.u32 %s409_s25, %s62_s28  ;;  %s75_s4 = scalar_lea.vmem [#allocation2], %s409_s25 }
  0x18   : >> { %s64_s30 = sand.u32 7, %s244_s29   ;;  %s84_s5 = sshll.u32 %s75_s4, 4  ;;  %s85_s5 = int_to_ptr.vmem [resolvable:$true] %s84_s5 }
  0x19   : >> { %s65_s3 = ssub.s32 0, %s64_s30  ;;  %s321_s26 = scalar_lea.hbm %s541_s1, 896 }
  0x1a   : >> { %s549_s3 = smov (!%p61_p8, %s65_s3), %s64_s30 }
  0x1b   : >> { %p246_p9 = scmp.lt.s32.totalorder %s549_s3, 0  ;;  %s71_s6 = sadd.s32 8, %s549_s3 }
  0x1c   : >> { %s247_s7 = sshll.u32 %s60_s27, 4 }
  0x1d   : >> { %s551_s6 = smov (!%p246_p9, %s71_s6), %s549_s3  ;;  %s74_s10 = scalar_lea.hbm %s541_s1, %s247_s7 }
  0x1e   : >> { %s76_s11 = scalar_lea.sflag [#allocation3], %s551_s6  ;;  %s319_s0 = scalar_lea.hbm %s74_s10, 16 }
  0x1f   : >> { %p320_p10 = scmp.ne.s32.totalorder %s74_s10, %s319_s0  ;;  %p322_p11 = scmp.lt.s32.totalorder %s74_s10, %s541_s1 }
  0x20   : >> { %p323_p12 = scmp.lt.s32.totalorder %s321_s26, %s319_s0 }
  0x22   : >> { %p324_p13 = por %p323_p12, %p322_p11 }
  0x24   : >> { %p325_p0 = pnand %p324_p13, %p320_p10 }
  0x26   : >> { %328 = shalt.err (!%p325_p0)  }
  0x27   : >> { %s329_s27 = scalar_lea.vmem %s85_s5, 16  ;;  %s416_s30 = smov [#allocation2]  }
  0x28   : >> { %p330_p1 = scmp.ne.s32.totalorder %s85_s5, %s329_s27  ;;  %s331_s3 = sshll.u32 %s416_s30, 4  ;;  %s332_s3 = int_to_ptr.vmem [resolvable:$false] %s331_s3 }
  0x29   : >> { %s333_s4 = scalar_lea.vmem %s332_s3, 128  ;;  %p334_p2 = scmp.lt.s32.totalorder %s85_s5, %s332_s3 }
  0x2a   : >> { %p335_p3 = scmp.lt.s32.totalorder %s333_s4, %s329_s27 }
  0x2c   : >> { %p336_p5 = por %p335_p3, %p334_p2 }
  0x2e   : >> { %p337_p7 = pnand %p336_p5, %p330_p1 }
  0x30   : >> { %340 = shalt.err (!%p337_p7)  }
  0x31   : >> { %87 = dma.hbm_to_vmem [thread:$0]  %s74_s10, 16, %s85_s5, %s76_s11 }
  0x32   : >> { %s58_s25 = sadd.s32 1, %s409_s25  }
  0x33   : >> { %p55_p8 = scmp.ge.s32.totalorder %s58_s25, 8  }
  0x34   : > { %s411_s6 = smov (%p55_p8), 0  }
  0x35   : > { %57 = sbr.rel (!%p55_p8) target bundleno = 21 (0x15), region = 73 }
  0x3a LB: >> { %p94_p9 = scmp.lt.s32.totalorder %s413_s6, 0  ;;  %s95_s7 = ssub.s32 0, %s413_s6  ;;  %s413_s6 = sphi %s411_s6, %s93_s6  }
  0x3b   : >> { %s248_s8 = smin.u32 %s413_s6, %s95_s7 }
  0x3c   : >> { %s97_s9 = sand.u32 7, %s248_s8  }
  0x3d   : >> { %s98_s0 = ssub.s32 0, %s97_s9 }
  0x3e   : >> { %s553_s0 = smov (!%p94_p9, %s98_s0), %s97_s9 }
  0x3f   : >> { %p250_p10 = scmp.lt.s32.totalorder %s553_s0, 0  ;;  %s104_s16 = sadd.s32 8, %s553_s0 }
  0x41   : >> { %s555_s16 = smov (!%p250_p10, %s104_s16), %s553_s0 }
  0x42   : >> { %s106_s5 = scalar_lea.sflag [#allocation3], %s555_s16 }
  0x43   : >> { %389 = dma.done.wait %s106_s5, 16 }
  0x44   : >> { %390 = vsyncadd %s106_s5, 4294967280  ;;  %s93_s6 = sadd.s32 1, %s413_s6  }
  0x45   : >> { %p90_p11 = scmp.ge.s32.totalorder %s93_s6, 8  }
  0x46   : > { %v110_v0 = vld [vmem:[#allocation2] sm:$0xff] (%p90_p11)  ;;  %s252_s22 = sshll.u32 (%p90_p11), %s405_s14, 7  ;;  %s126_s17 = sshll.u32 (%p90_p11), %s51_s24, 4  ;;  %s127_s17 = int_to_ptr.vmem [resolvable:$true] %s126_s17 }
  0x47   : > { %92 = sbr.rel (!%p90_p11) target bundleno = 58 (0x3a), region = 84  ;;  %111 = vst [vmem:[%s51_s24] sm:$0xff] (%p90_p11), %v110_v0  ;;  %s124_s11 = scalar_lea.hbm (%p90_p11), %s542_s2, %s252_s22 }
  0x48   : > { %s113_s26 = scalar_lea.sflag (%p90_p11), [#allocation7], %s49_s21  ;;  %s341_s28 = scalar_lea.vmem (%p90_p11), %s127_s17, 128 }
  0x49   : > { %p342_p12 = scmp.ne.s32.totalorder (%p90_p11), %s127_s17, %s341_s28  ;;  %s417_s29 = smov (%p90_p11), [#allocation6]  }
  0x4a   : > { %s345_s27 = sshll.u32 (%p90_p11), %s417_s29, 4  ;;  %s346_s27 = int_to_ptr.vmem [resolvable:$false] %s345_s27 }
  0x4b   : > { %p343_p13 = pnand (%p90_p11), %p342_p12, %p464_p4  ;;  %s347_s30 = scalar_lea.vmem (%p90_p11), %s346_s27, 256 }
  0x4c   : > { %p348_p1 = scmp.lt.s32.totalorder %s127_s17, %s346_s27  ;;  %p349_p2 = scmp.lt.s32.totalorder %s347_s30, %s341_s28 }
  0x4d   : > { %p344_p0 = pneg %p343_p13 }
  0x4e   : > { %p350_p3 = por %p349_p2, %p348_p1 }
  0x50   : > { %p351_p5 = pnand %p350_p3, %p344_p0 }
  0x52   : > { %354 = shalt.err (!%p351_p5)
}
  0x53   : > { %s355_s3 = scalar_lea.hbm %s124_s11, 128  ;;  %s359_s24 = scalar_lea.hbm %s542_s2, 256 }
  0x54   : > { %p356_p7 = scmp.ne.s32.totalorder %s124_s11, %s355_s3  ;;  %p360_p10 = scmp.lt.s32.totalorder %s124_s11, %s542_s2 }
  0x55   : > { %p361_p11 = scmp.lt.s32.totalorder %s359_s24, %s355_s3 }
  0x56   : > { %p357_p8 = pnand %p356_p7, %p464_p4 }
  0x57   : > { %p362_p12 = por %p361_p11, %p360_p10 }
  0x58   : > { %p358_p9 = pneg %p357_p8 }
  0x5a   : > { %p363_p13 = pnand %p362_p12, %p358_p9 }
  0x5c   : > { %366 = shalt.err (!%p363_p13)
}
  0x5d   : > { %263 = dma.vmem_to_hbm [thread:$0]  (%p464_p4), %s127_s17, 128, %s124_s11, %s113_s26  }
  0x5e PF: > { %p269_p0 = scmp.ge.s32.totalorder %s405_s14, 1  ;;  %s138_s7 = sand.u32 1, %s397_s12  }
  0x5f   : > { %s139_s8 = scalar_lea.sflag [#allocation7], %s138_s7 }
  0x60   : > { %p266_p1 = pnand %p269_p0, %p468_p6 }
  0x62   : > { %p267_p2 = pneg %p266_p1 }
  0x64   : > { %392 = dma.done.wait (%p267_p2), %s139_s8, 128  }
  0x65   : > { %394 = vsyncadd (%p267_p2), %s139_s8, 4294967168  ;;  %p16_p3 = scmp.ge.s32.totalorder %s453_s15, 3   ;;  %s545_s12 = smov %s401_s13 }
  0x66   : > { %s546_s13 = smov %s462_s18  ;;  %s547_s14 = smov %s453_s15 }
  0x67   :  { %18 = sbr.rel (!%p16_p3) target bundleno = 8 (0x8), region = 95 }
  0x6c   :  { %144 = vsyncpa [#allocation7], 1 }
  0x6d   :  { %146 = vsyncpa [#allocation7 + $0x1], 1 }
  0x6e   :  { %147 = vsyncmov [#allocation3] }
  0x71   :  { %s148_s14 = vpop.sfrf %147 }
  0x72   :  { %p255_p4 = scmp.ne.s32.totalorder %s148_s14, 0 }
  0x74   :  { %152 = shalt.err (%p255_p4)  }
  0x75   :  { %154 = vsyncmov [#allocation3 + $0x1] }
  0x78   :  { %s155_s19 = vpop.sfrf %154 }
  0x79   :  { %p256_p6 = scmp.ne.s32.totalorder %s155_s19, 0 }
  0x7b   :  { %159 = shalt.err (%p256_p6)  }
  0x7c   :  { %161 = vsyncmov [#allocation3 + $0x2] }
  0x7f   :  { %s162_s20 = vpop.sfrf %161 }
  0x80   :  { %p257_p5 = scmp.ne.s32.totalorder %s162_s20, 0 }
  0x82   :  { %166 = shalt.err (%p257_p5)  }
  0x83   :  { %168 = vsyncmov [#allocation3 + $0x3] }
  0x86   :  { %s169_s9 = vpop.sfrf %168 }
  0x87   :  { %p258_p7 = scmp.ne.s32.totalorder %s169_s9, 0 }
  0x89   :  { %173 = shalt.err (%p258_p7)  }
  0x8a   :  { %175 = vsyncmov [#allocation3 + $0x4] }
  0x8d   :  { %s176_s15 = vpop.sfrf %175 }
  0x8e   :  { %p259_p8 = scmp.ne.s32.totalorder %s176_s15, 0 }
  0x90   :  { %180 = shalt.err (%p259_p8)  }
  0x91   :  { %182 = vsyncmov [#allocation3 + $0x5] }
  0x94   :  { %s183_s1 = vpop.sfrf %182 }
  0x95   :  { %p260_p9 = scmp.ne.s32.totalorder %s183_s1, 0 }
  0x97   :  { %187 = shalt.err (%p260_p9)  }
  0x98   :  { %189 = vsyncmov [#allocation3 + $0x6] }
  0x9b   :  { %s190_s2 = vpop.sfrf %189 }
  0x9c   :  { %p261_p10 = scmp.ne.s32.totalorder %s190_s2, 0 }
  0x9e   :  { %194 = shalt.err (%p261_p10)  }
  0x9f   :  { %196 = vsyncmov [#allocation3 + $0x7] }
  0xa2   :  { %s197_s12 = vpop.sfrf %196 }
  0xa3   :  { %p262_p11 = scmp.ne.s32.totalorder %s197_s12, 0 }
  0xa5   :  { %201 = shalt.err (%p262_p11)  }

</bundles_post_ra>
